<compile_context>
chip_gen: v6e
topology: v6e:2x2x1
jax: 0.10.0
libtpu: 0.0.40
codegen_flags: <defaults>
</compile_context>

<pallas_src>
import functools
import math

import jax
import jax.numpy as jnp
from jax import lax
from jax.experimental import pallas as pl
from jax.experimental.pallas import tpu as pltpu

LANE = 128
SUB = 8
MAX_TILE_R = 64      # (8,128) super-rows per grid step -> 65536 boxes / tile


def _iou_loss_kernel(n_ref, pred_ref, tgt_ref, *rest,
                     loc_loss_type, with_weight, need_losses):
    if with_weight:
        weight_ref = rest[0]
        out_ref = rest[1]
    else:
        weight_ref = None
        out_ref = rest[0]

    # Each component is a (tile_r, 8, 128) block -> dense f32 vregs.
    pred_left, pred_top = pred_ref[0], pred_ref[1]
    pred_right, pred_bottom = pred_ref[2], pred_ref[3]
    target_left, target_top = tgt_ref[0], tgt_ref[1]
    target_right, target_bottom = tgt_ref[2], tgt_ref[3]

    # CSE of shared sub-expressions (areas / centers / ciou arctans).
    t_lr = target_left + target_right
    t_tb = target_top + target_bottom
    p_lr = pred_left + pred_right
    p_tb = pred_top + pred_bottom

    target_aera = t_lr * t_tb
    pred_aera = p_lr * p_tb

    w_intersect = (jnp.minimum(pred_left, target_left)
                   + jnp.minimum(pred_right, target_right))
    h_intersect = (jnp.minimum(pred_bottom, target_bottom)
                   + jnp.minimum(pred_top, target_top))

    area_intersect = w_intersect * h_intersect
    area_union = target_aera + pred_aera - area_intersect
    ious = (area_intersect + 1.0) / (area_union + 1.0)

    if loc_loss_type == 'iou':
        losses = -jnp.log(ious)
    elif loc_loss_type == 'linear_iou':
        losses = 1.0 - ious
    else:
        g_w_intersect = (jnp.maximum(pred_left, target_left)
                         + jnp.maximum(pred_right, target_right))
        g_h_intersect = (jnp.maximum(pred_bottom, target_bottom)
                         + jnp.maximum(pred_top, target_top))
        if loc_loss_type == 'giou':
            ac_uion = g_w_intersect * g_h_intersect
            gious = ious - (ac_uion - area_union) / ac_uion
            losses = 1.0 - gious
        elif loc_loss_type in ('diou', 'ciou'):
            # NOTE: formulas match the reference PyTorch module verbatim.
            diag_len = (g_w_intersect * g_w_intersect
                        + g_h_intersect * g_h_intersect + 1e-07)
            x_p = p_lr * 0.5
            y_p = p_tb * 0.5
            x_g = g_w_intersect - t_lr * 0.5
            y_g = g_h_intersect - t_tb * 0.5
            distance = (x_p - x_g) ** 2 + (y_p - y_g) ** 2
            losses = 1.0 - ious + distance / diag_len
            if loc_loss_type == 'ciou':
                v = (4.0 / math.pi ** 2) * (
                    jnp.arctan(t_lr / t_tb) - jnp.arctan(p_lr / p_tb)) ** 2
                alpha = v / (1.0 - ious + v + 1e-07)
                losses = losses + alpha * v
        else:
            raise NotImplementedError(loc_loss_type)

    if with_weight:
        losses = losses * weight_ref[...]

    # In-kernel tail mask (no mask array streamed from HBM): element (r, s, l)
    # of tile i has flat box index ((i*tile_r + r)*8 + s)*128 + l.
    tile_r = pred_ref.shape[1]
    shape3 = (tile_r, SUB, LANE)
    r_ids = lax.broadcasted_iota(jnp.int32, shape3, 0)
    s_ids = lax.broadcasted_iota(jnp.int32, shape3, 1)
    l_ids = lax.broadcasted_iota(jnp.int32, shape3, 2)
    base = pl.program_id(0) * tile_r
    flat_idx = ((base + r_ids) * SUB + s_ids) * LANE + l_ids
    losses = jnp.where(flat_idx < n_ref[0], losses, 0.0)

    if need_losses:
        out_ref[...] = losses
    else:
        # Per-tile partial sum kept as a lane-dense (8,128) slab; summed
        # outside the kernel so the grid axis can stay "parallel".
        out_ref[0] = jnp.sum(losses, axis=0)


def iou_loss(pred, target, weight=None, reduction='sum', loc_loss_type='iou'):
    """Pallas implementation of IOULoss.forward.

    pred, target: (N, 4) arrays of [left, top, right, bottom] distances.
    weight: optional (N,) array. reduction in {'sum', 'none', 'mean'}.
    """
    n = pred.shape[0]
    rows = max(1, -(-n // LANE))            # 128-wide lane rows
    r_total_needed = -(-rows // SUB)        # (8,128) super-rows
    tile_r = min(MAX_TILE_R, r_total_needed)
    num_tiles = -(-r_total_needed // tile_r)
    r_total = num_tiles * tile_r
    n_pad = r_total * SUB * LANE

    def to_kernel_layout(x):
        # (N, 4) -> (4, N_pad) -> (4, r_total, 8, 128); pad with a benign 1.0
        # so log/atan on pad lanes stay finite (pads are also masked in-kernel).
        xt = jnp.transpose(x.astype(jnp.float32))
        xt = jnp.pad(xt, ((0, 0), (0, n_pad - n)), constant_values=1.0)
        return xt.reshape(4, r_total, SUB, LANE)

    inputs = [to_kernel_layout(pred), to_kernel_layout(target)]
    in_specs = [
        pl.BlockSpec((4, tile_r, SUB, LANE), lambda i, n_ref: (0, i, 0, 0)),
        pl.BlockSpec((4, tile_r, SUB, LANE), lambda i, n_ref: (0, i, 0, 0)),
    ]

    with_weight = weight is not None
    if with_weight:
        w = jnp.pad(weight.astype(jnp.float32).reshape(-1), (0, n_pad - n))
        inputs.append(w.reshape(r_total, SUB, LANE))
        in_specs.append(
            pl.BlockSpec((tile_r, SUB, LANE), lambda i, n_ref: (i, 0, 0)))

    need_losses = reduction == 'none'
    if need_losses:
        out_shape = jax.ShapeDtypeStruct((r_total, SUB, LANE), jnp.float32)
        out_specs = pl.BlockSpec((tile_r, SUB, LANE), lambda i, n_ref: (i, 0, 0))
    else:
        out_shape = jax.ShapeDtypeStruct((num_tiles, SUB, LANE), jnp.float32)
        out_specs = pl.BlockSpec((1, SUB, LANE), lambda i, n_ref: (i, 0, 0))

    kernel = functools.partial(_iou_loss_kernel,
                               loc_loss_type=loc_loss_type,
                               with_weight=with_weight,
                               need_losses=need_losses)
    result = pl.pallas_call(
        kernel,
        out_shape=out_shape,
        grid_spec=pltpu.PrefetchScalarGridSpec(
            num_scalar_prefetch=1,
            grid=(num_tiles,),
            in_specs=in_specs,
            out_specs=out_specs,
        ),
        compiler_params=pltpu.CompilerParams(
            dimension_semantics=("parallel",)),
    )(jnp.array([n], jnp.int32), *inputs)

    if reduction == 'sum':
        return jnp.sum(result)
    elif reduction == 'mean':
        total = jnp.sum(result)
        return total / n if n > 0 else 0.0 * total
    elif reduction == 'none':
        return result.reshape(n_pad)[:n]
    elif reduction == 'batch':
        # TODO(synk): 'batch' reduction (losses.sum(dim=[1])) needs >1-D losses,
        # which an (N, 4) pred never produces in the reference module either.
        raise NotImplementedError
    else:
        raise NotImplementedError


def _iou_loss_ref(pred, target, weight=None, loc_loss_type='iou'):
    """Pure-JAX reference mirroring the PyTorch module; returns per-element losses."""
    pred = pred.astype(jnp.float32)
    target = target.astype(jnp.float32)
    pl_, pt, pr, pb = pred[:, 0], pred[:, 1], pred[:, 2], pred[:, 3]
    tl, tt, tr, tb = target[:, 0], target[:, 1], target[:, 2], target[:, 3]
    target_aera = (tl + tr) * (tt + tb)
    pred_aera = (pl_ + pr) * (pt + pb)
    w_int = jnp.minimum(pl_, tl) + jnp.minimum(pr, tr)
    h_int = jnp.minimum(pb, tb) + jnp.minimum(pt, tt)
    gw = jnp.maximum(pl_, tl) + jnp.maximum(pr, tr)
    gh = jnp.maximum(pb, tb) + jnp.maximum(pt, tt)
    ac = gw * gh
    diag = gw ** 2 + gh ** 2 + 1e-07
    x_p = (pr + pl_) / 2
    y_p = (pt + pb) / 2
    x_g = gw - (tr + tl) / 2
    y_g = gh - (tt + tb) / 2
    dist = (x_p - x_g) ** 2 + (y_p - y_g) ** 2
    area_int = w_int * h_int
    area_union = target_aera + pred_aera - area_int
    ious = (area_int + 1.0) / (area_union + 1.0)
    if loc_loss_type == 'iou':
        losses = -jnp.log(ious)
    elif loc_loss_type == 'linear_iou':
        losses = 1.0 - ious
    elif loc_loss_type == 'giou':
        losses = 1.0 - (ious - (ac - area_union) / ac)
    elif loc_loss_type == 'diou':
        losses = 1.0 - ious + dist / diag
    elif loc_loss_type == 'ciou':
        v = (4.0 / math.pi ** 2) * (jnp.arctan((tr + tl) / (tt + tb))
                                    - jnp.arctan((pr + pl_) / (pt + pb))) ** 2
        alpha = v / (1.0 - ious + v + 1e-07)
        losses = 1.0 - ious + dist / diag + alpha * v
    else:
        raise NotImplementedError(loc_loss_type)
    if weight is not None:
        losses = losses * weight
    return losses


if __name__ == "__main__":
    key = jax.random.PRNGKey(0)
    k1, k2, k3 = jax.random.split(key, 3)
    n = 8
    # l, t, r, b distances are non-negative in FCOS/CenterNet-style targets.
    pred = jax.random.uniform(k1, (n, 4), jnp.float32, minval=0.5, maxval=2.0)
    target = jax.random.uniform(k2, (n, 4), jnp.float32, minval=0.5, maxval=2.0)
    weight = jax.random.uniform(k3, (n,), jnp.float32, minval=0.1, maxval=1.0)

    # weighted 'iou', sum reduction
    out = jax.block_until_ready(
        iou_loss(pred, target, weight=weight, reduction='sum',
                 loc_loss_type='iou'))
    ref = jnp.sum(_iou_loss_ref(pred, target, weight=weight,
                                loc_loss_type='iou'))
    assert jnp.allclose(out, ref, rtol=1e-4, atol=1e-5), (out, ref)

    # unweighted 'giou', reduction='none'
    out_g = jax.block_until_ready(
        iou_loss(pred, target, reduction='none', loc_loss_type='giou'))
    ref_g = _iou_loss_ref(pred, target, loc_loss_type='giou')
    assert out_g.shape == (n,)
    assert jnp.allclose(out_g, ref_g, rtol=1e-4, atol=1e-5), (out_g, ref_g)

    # 'linear_iou' mean with a non-multiple-of-128 N (exercises in-kernel tail mask)
    n2 = 300
    k4, k5 = jax.random.split(k3)
    pred2 = jax.random.uniform(k4, (n2, 4), jnp.float32, minval=0.5, maxval=2.0)
    target2 = jax.random.uniform(k5, (n2, 4), jnp.float32, minval=0.5, maxval=2.0)
    out_m = jax.block_until_ready(
        iou_loss(pred2, target2, reduction='mean', loc_loss_type='linear_iou'))
    ref_m = jnp.mean(_iou_loss_ref(pred2, target2, loc_loss_type='linear_iou'))
    assert jnp.allclose(out_m, ref_m, rtol=1e-4, atol=1e-5), (out_m, ref_m)

    # weighted 'diou', sum reduction
    w2 = jnp.ones((n2,), jnp.float32)
    out_d = jax.block_until_ready(
        iou_loss(pred2, target2, weight=w2, reduction='sum',
                 loc_loss_type='diou'))
    ref_d = jnp.sum(_iou_loss_ref(pred2, target2, weight=w2,
                                  loc_loss_type='diou'))
    assert jnp.allclose(out_d, ref_d, rtol=1e-4, atol=1e-5), (out_d, ref_d)

    print("KERNEL_OK")
</pallas_src>

<mosaic_0001>
module attributes {stable_mosaic.version = 11 : i64} {
  func.func @_iou_loss_kernel(%arg0: i32, %arg1: memref<1xi32, #tpu.memory_space<smem>>, %arg2: memref<4x1x8x128xf32, #tpu.memory_space<vmem>>, %arg3: memref<4x1x8x128xf32, #tpu.memory_space<vmem>>, %arg4: memref<1x8x128xf32, #tpu.memory_space<vmem>>, %arg5: memref<1x8x128xf32, #tpu.memory_space<vmem>>) attributes {dimension_semantics = [#tpu.dimension_semantics<parallel>], iteration_bounds = array<i64: 1>, scalar_prefetch = 1 : i64, scratch_operands = 0 : i64, tpu.core_type = #tpu.core_type<tc>, window_params = [{transform_indices = @transform_0, window_bounds = array<i64: 4, 1, 8, 128>}, {transform_indices = @transform_1, window_bounds = array<i64: 4, 1, 8, 128>}, {transform_indices = @transform_2, window_bounds = array<i64: 1, 8, 128>}, {transform_indices = @transform_3, window_bounds = array<i64: 1, 8, 128>}]} {
    %c0 = arith.constant 0 : index
    %c0_0 = arith.constant 0 : index
    %c0_1 = arith.constant 0 : index
    %c0_2 = arith.constant 0 : index
    %0 = vector.load %arg2[%c0, %c0_0, %c0_1, %c0_2] : memref<4x1x8x128xf32, #tpu.memory_space<vmem>>, vector<1x1x8x128xf32>
    %1 = vector.shape_cast %0 : vector<1x1x8x128xf32> to vector<1x8x128xf32>
    %c1 = arith.constant 1 : index
    %c0_3 = arith.constant 0 : index
    %c0_4 = arith.constant 0 : index
    %c0_5 = arith.constant 0 : index
    %2 = vector.load %arg2[%c1, %c0_3, %c0_4, %c0_5] : memref<4x1x8x128xf32, #tpu.memory_space<vmem>>, vector<1x1x8x128xf32>
    %3 = vector.shape_cast %2 : vector<1x1x8x128xf32> to vector<1x8x128xf32>
    %c2 = arith.constant 2 : index
    %c0_6 = arith.constant 0 : index
    %c0_7 = arith.constant 0 : index
    %c0_8 = arith.constant 0 : index
    %4 = vector.load %arg2[%c2, %c0_6, %c0_7, %c0_8] : memref<4x1x8x128xf32, #tpu.memory_space<vmem>>, vector<1x1x8x128xf32>
    %5 = vector.shape_cast %4 : vector<1x1x8x128xf32> to vector<1x8x128xf32>
    %c3 = arith.constant 3 : index
    %c0_9 = arith.constant 0 : index
    %c0_10 = arith.constant 0 : index
    %c0_11 = arith.constant 0 : index
    %6 = vector.load %arg2[%c3, %c0_9, %c0_10, %c0_11] : memref<4x1x8x128xf32, #tpu.memory_space<vmem>>, vector<1x1x8x128xf32>
    %7 = vector.shape_cast %6 : vector<1x1x8x128xf32> to vector<1x8x128xf32>
    %c0_12 = arith.constant 0 : index
    %c0_13 = arith.constant 0 : index
    %c0_14 = arith.constant 0 : index
    %c0_15 = arith.constant 0 : index
    %8 = vector.load %arg3[%c0_12, %c0_13, %c0_14, %c0_15] : memref<4x1x8x128xf32, #tpu.memory_space<vmem>>, vector<1x1x8x128xf32>
    %9 = vector.shape_cast %8 : vector<1x1x8x128xf32> to vector<1x8x128xf32>
    %c1_16 = arith.constant 1 : index
    %c0_17 = arith.constant 0 : index
    %c0_18 = arith.constant 0 : index
    %c0_19 = arith.constant 0 : index
    %10 = vector.load %arg3[%c1_16, %c0_17, %c0_18, %c0_19] : memref<4x1x8x128xf32, #tpu.memory_space<vmem>>, vector<1x1x8x128xf32>
    %11 = vector.shape_cast %10 : vector<1x1x8x128xf32> to vector<1x8x128xf32>
    %c2_20 = arith.constant 2 : index
    %c0_21 = arith.constant 0 : index
    %c0_22 = arith.constant 0 : index
    %c0_23 = arith.constant 0 : index
    %12 = vector.load %arg3[%c2_20, %c0_21, %c0_22, %c0_23] : memref<4x1x8x128xf32, #tpu.memory_space<vmem>>, vector<1x1x8x128xf32>
    %13 = vector.shape_cast %12 : vector<1x1x8x128xf32> to vector<1x8x128xf32>
    %c3_24 = arith.constant 3 : index
    %c0_25 = arith.constant 0 : index
    %c0_26 = arith.constant 0 : index
    %c0_27 = arith.constant 0 : index
    %14 = vector.load %arg3[%c3_24, %c0_25, %c0_26, %c0_27] : memref<4x1x8x128xf32, #tpu.memory_space<vmem>>, vector<1x1x8x128xf32>
    %15 = vector.shape_cast %14 : vector<1x1x8x128xf32> to vector<1x8x128xf32>
    %16 = arith.addf %9, %13 : vector<1x8x128xf32>
    %17 = arith.addf %11, %15 : vector<1x8x128xf32>
    %18 = arith.addf %1, %5 : vector<1x8x128xf32>
    %19 = arith.addf %3, %7 : vector<1x8x128xf32>
    %20 = arith.mulf %16, %17 : vector<1x8x128xf32>
    %21 = arith.mulf %18, %19 : vector<1x8x128xf32>
    %22 = arith.minimumf %1, %9 : vector<1x8x128xf32>
    %23 = arith.minimumf %5, %13 : vector<1x8x128xf32>
    %24 = arith.addf %22, %23 : vector<1x8x128xf32>
    %25 = arith.minimumf %7, %15 : vector<1x8x128xf32>
    %26 = arith.minimumf %3, %11 : vector<1x8x128xf32>
    %27 = arith.addf %25, %26 : vector<1x8x128xf32>
    %28 = arith.mulf %24, %27 : vector<1x8x128xf32>
    %29 = arith.addf %20, %21 : vector<1x8x128xf32>
    %30 = arith.subf %29, %28 : vector<1x8x128xf32>
    %cst = arith.constant 1.000000e+00 : f32
    %31 = vector.broadcast %cst : f32 to vector<1x8x128xf32>
    %32 = arith.addf %28, %31 : vector<1x8x128xf32>
    %cst_28 = arith.constant 1.000000e+00 : f32
    %33 = vector.broadcast %cst_28 : f32 to vector<1x8x128xf32>
    %34 = arith.addf %30, %33 : vector<1x8x128xf32>
    %35 = arith.divf %32, %34 : vector<1x8x128xf32>
    %36 = math.log %35 : vector<1x8x128xf32>
    %cst_29 = arith.constant 0.000000e+00 : f32
    %37 = vector.broadcast %cst_29 : f32 to vector<1x8x128xf32>
    %38 = arith.subf %37, %36 : vector<1x8x128xf32>
    %c0_30 = arith.constant 0 : index
    %c0_31 = arith.constant 0 : index
    %c0_32 = arith.constant 0 : index
    %39 = vector.load %arg4[%c0_30, %c0_31, %c0_32] : memref<1x8x128xf32, #tpu.memory_space<vmem>>, vector<1x8x128xf32>
    %40 = arith.mulf %38, %39 : vector<1x8x128xf32>
    %41 = tpu.iota {dimensions = array<i32: 0>} : vector<1x8x128xi32>
    %42 = tpu.iota {dimensions = array<i32: 1>} : vector<1x8x128xi32>
    %43 = tpu.iota {dimensions = array<i32: 2>} : vector<1x8x128xi32>
    %c1_i32 = arith.constant 1 : i32
    %44 = arith.muli %arg0, %c1_i32 : i32
    %45 = vector.broadcast %44 : i32 to vector<1x8x128xi32>
    %46 = arith.addi %45, %41 : vector<1x8x128xi32>
    %c8_i32 = arith.constant 8 : i32
    %47 = vector.broadcast %c8_i32 : i32 to vector<1x8x128xi32>
    %48 = arith.muli %46, %47 : vector<1x8x128xi32>
    %49 = arith.addi %48, %42 : vector<1x8x128xi32>
    %c128_i32 = arith.constant 128 : i32
    %50 = vector.broadcast %c128_i32 : i32 to vector<1x8x128xi32>
    %51 = arith.muli %49, %50 : vector<1x8x128xi32>
    %52 = arith.addi %51, %43 : vector<1x8x128xi32>
    %c0_33 = arith.constant 0 : index
    %53 = memref.load %arg1[%c0_33] : memref<1xi32, #tpu.memory_space<smem>>
    %54 = vector.broadcast %53 : i32 to vector<1x8x128xi32>
    %55 = arith.cmpi slt, %52, %54 : vector<1x8x128xi32>
    %cst_34 = arith.constant 0.000000e+00 : f32
    %56 = vector.broadcast %cst_34 : f32 to vector<1x8x128xf32>
    %57 = arith.select %55, %40, %56 : vector<1x8x128xi1>, vector<1x8x128xf32>
    %cst_35 = arith.constant dense<0.000000e+00> : vector<8x128xf32>
    %58 = vector.multi_reduction <add>, %57, %cst_35 [0] : vector<1x8x128xf32> to vector<8x128xf32>
    %c0_36 = arith.constant 0 : index
    %c0_37 = arith.constant 0 : index
    %c0_38 = arith.constant 0 : index
    %59 = vector.load %arg5[%c0_36, %c0_37, %c0_38] : memref<1x8x128xf32, #tpu.memory_space<vmem>>, vector<1x8x128xf32>
    %60 = vector.shape_cast %59 : vector<1x8x128xf32> to vector<8x128xf32>
    %61 = vector.shape_cast %58 : vector<8x128xf32> to vector<1x8x128xf32>
    tpu.vector_store %arg5[%c0_36, %c0_37, %c0_38], %61 {strides = array<i32>} : memref<1x8x128xf32, #tpu.memory_space<vmem>>, vector<1x8x128xf32>,
    return
  }
  func.func @transform_0(%arg0: i32, %arg1: memref<1xi32, #tpu.memory_space<smem>>) -> (i32, i32, i32, i32) {
    %c0_i32 = arith.constant 0 : i32
    %c0_i32_0 = arith.constant 0 : i32
    %c0_i32_1 = arith.constant 0 : i32
    %c0_i32_2 = arith.constant 0 : i32
    return %c0_i32, %arg0, %c0_i32_0, %c0_i32_1 : i32, i32, i32, i32
  }
  func.func @transform_1(%arg0: i32, %arg1: memref<1xi32, #tpu.memory_space<smem>>) -> (i32, i32, i32, i32) {
    %c0_i32 = arith.constant 0 : i32
    %c0_i32_0 = arith.constant 0 : i32
    %c0_i32_1 = arith.constant 0 : i32
    %c0_i32_2 = arith.constant 0 : i32
    return %c0_i32, %arg0, %c0_i32_0, %c0_i32_1 : i32, i32, i32, i32
  }
  func.func @transform_2(%arg0: i32, %arg1: memref<1xi32, #tpu.memory_space<smem>>) -> (i32, i32, i32) {
    %c0_i32 = arith.constant 0 : i32
    %c0_i32_0 = arith.constant 0 : i32
    %c0_i32_1 = arith.constant 0 : i32
    return %arg0, %c0_i32, %c0_i32_0 : i32, i32, i32
  }
  func.func @transform_3(%arg0: i32, %arg1: memref<1xi32, #tpu.memory_space<smem>>) -> (i32, i32, i32) {
    %c0_i32 = arith.constant 0 : i32
    %c0_i32_0 = arith.constant 0 : i32
    %c0_i32_1 = arith.constant 0 : i32
    return %arg0, %c0_i32, %c0_i32_0 : i32, i32, i32
  }
}

</mosaic_0001>

<bundles_post_ra>
// kernel: tpu_custom_call.1
= control target key start
LH: loop header
LB: loop body
LE: loop exit
PB: predicated region body
PF: predicated region fallthrough
CT: control target
= control target key end

     0   :  { %10 = vsyncpa [#allocation5], 0  ;;  %s267_s0 = inlined_call_operand.<no memory space> [shape: s32[1], index: 0, kind: input, shape index: {}]   ;;  %s268_s1 = inlined_call_operand.hbm [shape: f32[4,1,8,128], index: 1, kind: input, shape index: {}]   ;;  %s269_s2 = inlined_call_operand.hbm [shape: f32[4,1,8,128], index: 2, kind: input, shape index: {}]   ;;  %s270_s3 = inlined_call_operand.hbm [shape: f32[1,8,128], index: 3, kind: input, shape index: {}]   ;;  %s271_s4 = inlined_call_operand.hbm [shape: f32[1,8,128], index: 4, kind: output, shape index: {}]  }
   0x1   :  { %11 = vsyncpa [#allocation8], 0 }
   0x2   :  { %12 = vsyncpa [#allocation6], 0  ;;  %s221_s15 = smov [#allocation7]   ;;  %s222_s17 = smov [#allocation4]  }
   0x3   :  { %s30_s16 = sshll.u32 %s221_s15, 4  ;;  %s18_s18 = sshll.u32 %s222_s17, 4  ;;  %s31_s16 = int_to_ptr.vmem [resolvable:$true] %s30_s16  ;;  %s19_s18 = int_to_ptr.vmem [resolvable:$true] %s18_s18 }
   0x4   :  { %s143_s19 = scalar_lea.vmem %s31_s16, 512  ;;  %p148_p1 = scmp.lt.s32.totalorder %s31_s16, %s31_s16 }
   0x5   :  { %p144_p0 = scmp.ne.s32.totalorder %s31_s16, %s143_s19  ;;  %p149_p2 = scmp.lt.s32.totalorder %s143_s19, %s143_s19 }
   0x7   :  { %p150_p3 = por %p149_p2, %p148_p1 }
   0x9   :  { %p151_p4 = pnand %p150_p3, %p144_p0 }
   0xb   :  { %154 = shalt.err (!%p151_p4)
}
   0xc   :  { %s223_s20 = smov 128   ;;  %s224_s21 = smov 8  }
   0xd   :  { %36 = dma.hbm_to_vmem [thread:$0]  %s269_s2, 512, %s31_s16, [#allocation8], %s223_s20, %s223_s20, %s224_s21  }
   0xe   :  { %s163_s24 = scalar_lea.vmem %s19_s18, 512  ;;  %p168_p6 = scmp.lt.s32.totalorder %s19_s18, %s19_s18 }
   0xf   :  { %p164_p5 = scmp.ne.s32.totalorder %s19_s18, %s163_s24  ;;  %p169_p7 = scmp.lt.s32.totalorder %s163_s24, %s163_s24 }
  0x11   :  { %p170_p8 = por %p169_p7, %p168_p6 }
  0x13   :  { %p171_p9 = pnand %p170_p8, %p164_p5 }
  0x15   :  { %174 = shalt.err (!%p171_p9)
}
  0x16   :  { %24 = dma.hbm_to_vmem [thread:$0]  %s268_s1, 512, %s19_s18, [#allocation5], %s223_s20, %s223_s20, %s224_s21  }
  0x17   :  { %s225_s27 = smov [#allocation9]  }
  0x18   :  { %s43_s28 = sshll.u32 %s225_s27, 4  ;;  %s44_s28 = int_to_ptr.vmem [resolvable:$true] %s43_s28 }
  0x19   :  { %s183_s29 = scalar_lea.vmem %s44_s28, 128  ;;  %p188_p11 = scmp.lt.s32.totalorder %s44_s28, %s44_s28 }
  0x1a   :  { %p184_p10 = scmp.ne.s32.totalorder %s44_s28, %s183_s29  ;;  %p189_p12 = scmp.lt.s32.totalorder %s183_s29, %s183_s29 }
  0x1c   :  { %p190_p13 = por %p189_p12, %p188_p11 }
  0x1e   :  { %p191_p0 = pnand %p190_p13, %p184_p10 }
  0x20   :  { %194 = shalt.err (!%p191_p0)
}
  0x21   :  { %46 = dma.hbm_to_vmem [thread:$0]  %s270_s3, 128, %s44_s28, [#allocation8]  }
  0x22   :  { %215 = dma.done.wait [#allocation5], 512  }
  0x23   :  { %216 = vsyncadd [#allocation5], 4294966784 }
  0x24   :  { %217 = dma.done.wait [#allocation8], 640  }
  0x25   :  { %218 = vsyncadd [#allocation8], 4294966656  ;;  %v56_v0 = vld [vmem:[#allocation4] sm:$0xff]  ;;  %v58_v1 = vld [vmem:[#allocation4 + $0x8] sm:$0xff]  ;;  %v94_v27 = vlaneseq  ;;  %v104_v34 = vstv %s267_s0  ;;  %s226_s5 = smov [#allocation10]  }
  0x26   :  { %v60_v2 = vld [vmem:[#allocation4 + $0x10] sm:$0xff]  ;;  %v62_v3 = vld [vmem:[#allocation4 + $0x18] sm:$0xff]  ;;  %v63_v4 = vld [vmem:[#allocation7] sm:$0xff]  ;;  %s115_s6 = sshll.u32 %s226_s5, 4  ;;  %s116_s6 = int_to_ptr.vmem [resolvable:$true] %s115_s6 }
  0x27   :  { %v65_v5 = vld [vmem:[#allocation7 + $0x8] sm:$0xff]  ;;  %v72_v6 = vadd.f32 %v60_v2, %v56_v0  ;;  %v67_v7 = vld [vmem:[#allocation7 + $0x10] sm:$0xff]  ;;  %v69_v8 = vld [vmem:[#allocation7 + $0x18] sm:$0xff]  ;;  %v73_v9 = vadd.f32 %v62_v3, %v58_v1  ;;  %v76_v10 = vmin.f32 %v56_v0, %v63_v4  ;;  %v95_v28 = vshrl.u32 %v94_v27, 7  ;;  %s195_s7 = scalar_lea.vmem %s116_s6, 128  ;;  %p200_p2 = scmp.lt.s32.totalorder %s116_s6, %s116_s6 }
  0x28   :  { %v80_v11 = vmin.f32 %v58_v1, %v65_v5  ;;  %v70_v12 = vadd.f32 %v67_v7, %v63_v4  ;;  %v71_v13 = vadd.f32 %v69_v8, %v65_v5  ;;  %v77_v14 = vmin.f32 %v60_v2, %v67_v7  ;;  %v92_v35 = vld [vmem:[#allocation9] sm:$0xff]  ;;  %p196_p1 = scmp.ne.s32.totalorder %s116_s6, %s195_s7  ;;  %p201_p3 = scmp.lt.s32.totalorder %s195_s7, %s195_s7 }
  0x29   :  { %v79_v15 = vmin.f32 %v62_v3, %v69_v8  ;;  %v75_v16 = vmul.f32 %v73_v9, %v72_v6  ;;  %v97_v29 = vand.u32 127, %v94_v27  ;;  %v101_v30 = vmul.u32 128, %v95_v28 }
  0x2a   :  { %v74_v17 = vmul.f32 %v71_v13, %v70_v12  ;;  %v78_v18 = vadd.f32 %v77_v14, %v76_v10  ;;  %p202_p4 = por %p201_p3, %p200_p2 }
  0x2b   :  { %v81_v19 = vadd.f32 %v80_v11, %v79_v15  ;;  %v102_v32 = vadd.s32 %v101_v30, %v97_v29 }
  0x2c   :  { %v83_v21 = vadd.f32 %v75_v16, %v74_v17  ;;  %p203_p5 = pnand %p202_p4, %p196_p1 }
  0x2d   :  { %v82_v20 = vmul.f32 %v81_v19, %v78_v18  ;;  %vm105_vm0 = vcmp.lt.s32.totalorder %v102_v32, %v104_v34 }
  0x2f   :  { %v84_v22 = vsub.f32 %v83_v21, %v82_v20  ;;  %v85_v24 = vadd.f32 1.0, %v82_v20 }
  0x31   :  { %v86_v23 = vadd.f32 1.0, %v84_v22 }
  0x33   :  { %131 = vrcp.f32 %v86_v23 }
  0x40   :  { %v132_v25 = vpop.eup %131 }
  0x41   :  { %v88_v26 = vmul.f32 %v132_v25, %v85_v24 }
  0x43   :  { %133 = vlog2.f32 %v88_v26 }
  0x50   :  { %v134_v31 = vpop.eup %133 }
  0x51   :  { %v90_v33 = vmul.f32 0.6931472, %v134_v31 }
  0x53   :  { %v91_v36 = vsub.f32 0.0, %v90_v33 }
  0x55   :  { %v93_v37 = vmul.f32 %v92_v35, %v91_v36 }
  0x57   :  { %v106_v38 = vsel %vm105_vm0, %v93_v37, 0.0 }
  0x58   :  { %108 = vst [vmem:[#allocation10] sm:$0xff] %v106_v38 }
  0x59   :  { %206 = shalt.err (!%p203_p5)
}
  0x5a   :  { %118 = dma.vmem_to_hbm [thread:$0]  %s116_s6, 128, %s271_s4, [#allocation6]  }
  0x5b   :  { %219 = dma.done.wait [#allocation6], 128  }
  0x5c   :  { %220 = vsyncadd [#allocation6], 4294967168 }
  0x5d   :  { %122 = vsyncpa [#allocation5], 1 }
  0x5e   :  { %123 = vsyncpa [#allocation8], 1 }
  0x5f   :  { %124 = vsyncpa [#allocation6], 1 }

</bundles_post_ra>
